<compile_context>
chip_gen: v6e
topology: v6e:2x2x1
jax: 0.10.0
libtpu: 0.0.40
codegen_flags: <defaults>
</compile_context>

<pallas_src>
import functools

import jax
import jax.numpy as jnp
from jax.experimental import pallas as pl
from jax.experimental.pallas import tpu as pltpu

LN_EPS = 1e-5  # nn.LayerNorm default


def _attn_group_kernel(x_ref, pp_ref, wq_ref, bq_ref, wk_ref, bk_ref, hm_ref,
                       xout_ref, policy_ref, probs_ref, *, scale):
    x = x_ref[...]                       # (TB, N, C) f32
    pp = pp_ref[...]                     # (TB, N)    f32, lane-dense

    # x = x * prev_policy.unsqueeze(2)
    xm = x * pp[:, :, None]

    # LayerNorm(dim, elementwise_affine=False): biased moments, var = E[x^2] - mean^2.
    mean = jnp.mean(xm, axis=-1, keepdims=True)
    var = jnp.mean(xm * xm, axis=-1, keepdims=True) - mean * mean
    xn = (xm - mean) * jax.lax.rsqrt(var + LN_EPS)           # (TB, N, C) f32

    tb, n, c = xn.shape
    xn_b2 = xn.reshape(tb * n, c).astype(jnp.bfloat16)        # (TB*N, C) bf16

    # Batched k projection: ONE full-width, shared-RHS MXU matmul (f32 accumulate).
    k = jnp.dot(xn_b2, wk_ref[...],
                preferred_element_type=jnp.float32) + bk_ref[...]          # (TB*N, C)

    # Only token 0 of q is ever consumed -> project just those TB rows.
    q0 = jnp.dot(xn[:, 0, :].astype(jnp.bfloat16), wq_ref[...],
                 preferred_element_type=jnp.float32) + bq_ref[...]         # (TB, C)

    # attn logits per head: sum over each head's channels of q0 * k
    # (single (TB*N, C) @ (C, H) matmul against the 0/1 head-indicator matrix).
    qk_prod = k.reshape(tb, n, c) * q0[:, None, :]                          # f32 VPU
    head_sums = jnp.dot(qk_prod.reshape(tb * n, c).astype(jnp.bfloat16), hm_ref[...],
                        preferred_element_type=jnp.float32).reshape(tb, n, -1)  # (TB, N, H)

    attn = jax.nn.sigmoid(head_sums * scale)                 # f32 (EUP)
    probs = jnp.mean(attn, axis=-1) * pp                     # (TB, N), lane-dense

    # policy_map: probs > 0.5 -> 1 else 0; token 0 forced to 1.
    pol = jnp.where(probs > 0.5, 1.0, 0.0).astype(x.dtype)
    tok = jax.lax.broadcasted_iota(jnp.int32, pol.shape, 1)
    pol = jnp.where(tok == 0, jnp.ones_like(pol), pol)

    # forward_features / sample_pos: x_out = policy.unsqueeze(2) * (original x).
    xout_ref[...] = (pol[:, :, None] * x).astype(xout_ref.dtype)
    policy_ref[...] = pol.astype(policy_ref.dtype)
    probs_ref[...] = probs.astype(probs_ref.dtype)


def _tpu_vmem_and_cores():
    """(tile_budget_bytes, vmem_limit_bytes, num_tensorcores) — generation aware."""
    kind = ""
    try:
        kind = jax.devices()[0].device_kind.lower()
    except Exception:
        pass
    try:
        cap = int(getattr(pltpu.get_tpu_info(), "vmem_capacity_bytes"))
    except Exception:
        cap = 64 << 20                          # conservative fallback
    if "v7" in kind:
        cap = min(cap, 64 << 20)                # v7x: 64 MiB per TensorCore
    # Raise the scoped limit well above the 16/32 MiB defaults, leave compiler headroom.
    vmem_limit = max(16 << 20, min(cap - (16 << 20), 100 << 20))
    budget = (vmem_limit * 3) // 4              # tile-sizing budget under that limit
    num_tc = 2 if "v7" in kind else 1
    return budget, vmem_limit, num_tc


def _pick_batch_tile(batch, tokens, channels, num_heads, vmem_budget, num_tc):
    """Largest batch tile that fits the VMEM budget (mem-bound kernel => big tiles)."""
    # Per batch element per grid step (bytes):
    #   x + x_out blocks (f32, double-buffered) .......... 16 * N*C
    #   live intermediates (xm/xn f32, xn bf16, k, q*k) ... ~14 * N*C
    #   pp / policy / probs blocks (double-buffered) ...... 24 * N
    per_batch = 30 * tokens * channels + 24 * tokens
    # Shared residents: two bf16 weights + biases + head map, double-buffered by the
    # pipeline even though their block index never changes (re-fetch is skipped).
    fixed = 2 * (2 * channels * channels * 2) + 2 * (2 * channels * 4) \
            + 2 * (channels * num_heads * 2)
    avail = max(vmem_budget - fixed, per_batch)
    tb = max(1, min(batch, avail // per_batch))
    if num_tc >= 2 and batch >= 2:
        tb = max(1, min(tb, batch // 2))        # dual-TC: keep the parallel axis >= 2 steps
    if tb >= 8:
        tb = (tb // 8) * 8                      # aligned leading dim when B allows
    while batch % tb or (num_tc >= 2 and tb > 1 and (batch // tb) % 2):
        tb -= 1
    return tb


def attn_group_forward(x, qk_weight, qk_bias, *, num_heads=6, prev_policy=None,
                       donate_x=False):
    """x: (B, N, C) f32. qk_weight: (3C, C) (PyTorch nn.Linear layout). qk_bias: (3C,)."""
    B, N, C = x.shape
    assert C % num_heads == 0
    head_dim = C // num_heads
    scale = head_dim ** (-0.5)

    if prev_policy is None:
        prev_policy = jnp.ones((B, N), dtype=x.dtype)
    pp = prev_policy.reshape(B, N).astype(x.dtype)

    # Only the q and k thirds of the fused (3C, C) Linear are live (v third is dead).
    # Pre-transpose to (C_in, C_out) bf16 for row-major MXU matmuls (f32 accumulate).
    wq_t = qk_weight[:C, :].T.astype(jnp.bfloat16)
    wk_t = qk_weight[C:2 * C, :].T.astype(jnp.bfloat16)
    bq = qk_bias[:C].reshape(1, C).astype(jnp.float32)
    bk = qk_bias[C:2 * C].reshape(1, C).astype(jnp.float32)

    # Head indicator: hm[c, h] = 1 iff channel c belongs to head h (exact 0/1 in bf16).
    hm = (jnp.arange(C)[:, None] // head_dim
          == jnp.arange(num_heads)[None, :]).astype(jnp.bfloat16)

    budget, vmem_limit, num_tc = _tpu_vmem_and_cores()
    TB = _pick_batch_tile(B, N, C, num_heads, budget, num_tc)

    flops = 2 * B * N * C * C + 2 * B * C * C + 2 * B * N * C * num_heads + 10 * B * N * C
    bytes_accessed = 2 * B * N * C * 4 + 3 * B * N * 4 + 2 * C * C * 2 + 4 * C * 4
    cost = pl.CostEstimate(flops=flops,
                           transcendentals=B * N * num_heads,
                           bytes_accessed=bytes_accessed)

    kernel = functools.partial(_attn_group_kernel, scale=scale)

    x_out, policy, probs = pl.pallas_call(
        kernel,
        out_shape=(
            jax.ShapeDtypeStruct((B, N, C), x.dtype),
            jax.ShapeDtypeStruct((B, N), x.dtype),
            jax.ShapeDtypeStruct((B, N), x.dtype),
        ),
        grid_spec=pltpu.PrefetchScalarGridSpec(
            num_scalar_prefetch=0,
            grid=(B // TB,),
            in_specs=[
                pl.BlockSpec((TB, N, C), lambda b: (b, 0, 0)),      # x
                pl.BlockSpec((TB, N), lambda b: (b, 0)),            # prev_policy (lane-dense)
                pl.BlockSpec((C, C), lambda b: (0, 0)),             # Wq^T (bf16)
                pl.BlockSpec((1, C), lambda b: (0, 0)),             # bq
                pl.BlockSpec((C, C), lambda b: (0, 0)),             # Wk^T (bf16)
                pl.BlockSpec((1, C), lambda b: (0, 0)),             # bk
                pl.BlockSpec((C, num_heads), lambda b: (0, 0)),     # head indicator (bf16)
            ],
            out_specs=[
                pl.BlockSpec((TB, N, C), lambda b: (b, 0, 0)),      # x_out
                pl.BlockSpec((TB, N), lambda b: (b, 0)),            # policy (lane-dense)
                pl.BlockSpec((TB, N), lambda b: (b, 0)),            # probs  (lane-dense)
            ],
        ),
        compiler_params=pltpu.CompilerParams(
            dimension_semantics=("parallel",),
            vmem_limit_bytes=int(vmem_limit)),
        cost_estimate=cost,
        input_output_aliases=({0: 0} if donate_x else {}),
    )(x, pp, wq_t, bq, wk_t, bk, hm)

    return x_out, policy, probs


def _reference(x, qk_weight, qk_bias, num_heads):
    """Pure-JAX f32 reference of the default AttnGroup forward path."""
    B, N, C = x.shape
    head_dim = C // num_heads
    scale = head_dim ** (-0.5)
    pp = jnp.ones((B, N), x.dtype)
    xm = x * pp[:, :, None]
    mean = jnp.mean(xm, axis=-1, keepdims=True)
    var = jnp.mean(jnp.square(xm - mean), axis=-1, keepdims=True)
    xn = (xm - mean) / jnp.sqrt(var + LN_EPS)
    qk = xn @ qk_weight.T + qk_bias
    q = qk[..., :C].reshape(B, N, num_heads, head_dim)
    k = qk[..., C:2 * C].reshape(B, N, num_heads, head_dim)
    att = jax.nn.sigmoid(jnp.einsum('bhd,bnhd->bhn', q[:, 0], k) * scale)
    probs = jnp.mean(att, axis=1) * pp
    pol = jnp.where(probs > 0.5, 1.0, 0.0)
    pol = pol.at[:, 0].set(1.0)
    return pol[:, :, None] * x, pol, probs


if __name__ == "__main__":
    # Small shapes consistent with the module: dim must be divisible by num_heads=6.
    B, N, C = 2, 8, 48
    num_heads = 6

    key = jax.random.PRNGKey(0)
    kx, kw, kb = jax.random.split(key, 3)

    x = jax.random.normal(kx, (B, N, C), dtype=jnp.float32)
    # Deterministic synthetic parameters for the fused qk Linear (out=3C, in=C) + bias.
    qk_weight = 0.05 * jax.random.normal(kw, (3 * C, C), dtype=jnp.float32)
    qk_bias = 0.05 * jax.random.normal(kb, (3 * C,), dtype=jnp.float32)

    x_out, policy, probs = attn_group_forward(x, qk_weight, qk_bias, num_heads=num_heads)
    jax.block_until_ready((x_out, policy, probs))

    assert x_out.shape == (B, N, C)
    assert policy.shape == (B, N)
    assert probs.shape == (B, N)

    # Light correctness checks vs. a pure-JAX f32 reference (bf16 MXU rounding ~1e-3).
    x_ref, pol_ref, probs_ref = _reference(x, qk_weight, qk_bias, num_heads)
    assert float(jnp.max(jnp.abs(probs - probs_ref))) < 2e-2
    decided = jnp.abs(probs_ref - 0.5) > 5e-3          # skip tokens right at the threshold
    assert bool(jnp.all(jnp.where(decided, policy == pol_ref, True)))
    assert bool(jnp.allclose(x_out, policy[:, :, None] * x))

    print("KERNEL_OK")
</pallas_src>

<mosaic_0001>
module attributes {stable_mosaic.version = 11 : i64} {
  func.func @_attn_group_kernel(%arg0: i32, %arg1: memref<2x8x48xf32, #tpu.memory_space<vmem>>, %arg2: memref<2x8xf32, #tpu.memory_space<vmem>>, %arg3: memref<48x48xbf16, #tpu.memory_space<vmem>>, %arg4: memref<1x48xf32, #tpu.memory_space<vmem>>, %arg5: memref<48x48xbf16, #tpu.memory_space<vmem>>, %arg6: memref<1x48xf32, #tpu.memory_space<vmem>>, %arg7: memref<48x6xbf16, #tpu.memory_space<vmem>>, %arg8: memref<2x8x48xf32, #tpu.memory_space<vmem>>, %arg9: memref<2x8xf32, #tpu.memory_space<vmem>>, %arg10: memref<2x8xf32, #tpu.memory_space<vmem>>) attributes {dimension_semantics = [#tpu.dimension_semantics<parallel>], iteration_bounds = array<i64: 1>, scalar_prefetch = 0 : i64, scratch_operands = 0 : i64, tpu.core_type = #tpu.core_type<tc>, window_params = [{transform_indices = @transform_0, window_bounds = array<i64: 2, 8, 48>}, {transform_indices = @transform_1, window_bounds = array<i64: 2, 8>}, {pipeline_mode = #tpu.pipeline_mode<synchronous>, transform_indices = @transform_2, window_bounds = array<i64: 48, 48>}, {pipeline_mode = #tpu.pipeline_mode<synchronous>, transform_indices = @transform_3, window_bounds = array<i64: 1, 48>}, {pipeline_mode = #tpu.pipeline_mode<synchronous>, transform_indices = @transform_4, window_bounds = array<i64: 48, 48>}, {pipeline_mode = #tpu.pipeline_mode<synchronous>, transform_indices = @transform_5, window_bounds = array<i64: 1, 48>}, {pipeline_mode = #tpu.pipeline_mode<synchronous>, transform_indices = @transform_6, window_bounds = array<i64: 48, 6>}, {transform_indices = @transform_7, window_bounds = array<i64: 2, 8, 48>}, {transform_indices = @transform_8, window_bounds = array<i64: 2, 8>}, {transform_indices = @transform_9, window_bounds = array<i64: 2, 8>}]} {
    %c0 = arith.constant 0 : index
    %c0_0 = arith.constant 0 : index
    %c0_1 = arith.constant 0 : index
    %0 = vector.load %arg1[%c0, %c0_0, %c0_1] : memref<2x8x48xf32, #tpu.memory_space<vmem>>, vector<2x8x48xf32>
    %c0_2 = arith.constant 0 : index
    %c0_3 = arith.constant 0 : index
    %1 = vector.load %arg2[%c0_2, %c0_3] : memref<2x8xf32, #tpu.memory_space<vmem>>, vector<2x8xf32>
    %2 = vector.shape_cast %1 : vector<2x8xf32> to vector<2x8x1xf32>
    %3 = vector.broadcast %2 : vector<2x8x1xf32> to vector<2x8x48xf32>
    %4 = arith.mulf %0, %3 : vector<2x8x48xf32>
    %cst = arith.constant dense<0.000000e+00> : vector<2x8xf32>
    %5 = vector.multi_reduction <add>, %4, %cst [2] : vector<2x8x48xf32> to vector<2x8xf32>
    %6 = vector.shape_cast %5 : vector<2x8xf32> to vector<2x8x1xf32>
    %cst_4 = arith.constant 4.800000e+01 : f32
    %7 = vector.broadcast %cst_4 : f32 to vector<2x8x1xf32>
    %8 = arith.divf %6, %7 : vector<2x8x1xf32>
    %9 = arith.mulf %4, %4 : vector<2x8x48xf32>
    %cst_5 = arith.constant dense<0.000000e+00> : vector<2x8xf32>
    %10 = vector.multi_reduction <add>, %9, %cst_5 [2] : vector<2x8x48xf32> to vector<2x8xf32>
    %11 = vector.shape_cast %10 : vector<2x8xf32> to vector<2x8x1xf32>
    %cst_6 = arith.constant 4.800000e+01 : f32
    %12 = vector.broadcast %cst_6 : f32 to vector<2x8x1xf32>
    %13 = arith.divf %11, %12 : vector<2x8x1xf32>
    %14 = arith.mulf %8, %8 : vector<2x8x1xf32>
    %15 = arith.subf %13, %14 : vector<2x8x1xf32>
    %16 = vector.broadcast %8 : vector<2x8x1xf32> to vector<2x8x48xf32>
    %17 = arith.subf %4, %16 : vector<2x8x48xf32>
    %cst_7 = arith.constant 9.99999974E-6 : f32
    %18 = vector.broadcast %cst_7 : f32 to vector<2x8x1xf32>
    %19 = arith.addf %15, %18 : vector<2x8x1xf32>
    %20 = math.rsqrt %19 : vector<2x8x1xf32>
    %21 = vector.broadcast %20 : vector<2x8x1xf32> to vector<2x8x48xf32>
    %22 = arith.mulf %17, %21 : vector<2x8x48xf32>
    %23 = vector.shape_cast %22 : vector<2x8x48xf32> to vector<16x48xf32>
    %24 = arith.truncf %23 : vector<16x48xf32> to vector<16x48xbf16>
    %c0_8 = arith.constant 0 : index
    %c0_9 = arith.constant 0 : index
    %25 = vector.load %arg5[%c0_8, %c0_9] : memref<48x48xbf16, #tpu.memory_space<vmem>>, vector<48x48xbf16>
    %cst_10 = arith.constant dense<0.000000e+00> : vector<16x48xf32>
    %26 = tpu.matmul %24, %25, %cst_10 {dimension_numbers = #tpu.dot_dimension_numbers<[1], [0], [0], [1], [0, 0, 1, 1], [], []>} : vector<16x48xbf16>, vector<48x48xbf16>, vector<16x48xf32> -> vector<16x48xf32>
    %c0_11 = arith.constant 0 : index
    %c0_12 = arith.constant 0 : index
    %27 = vector.load %arg6[%c0_11, %c0_12] : memref<1x48xf32, #tpu.memory_space<vmem>>, vector<1x48xf32>
    %28 = vector.broadcast %27 : vector<1x48xf32> to vector<16x48xf32>
    %29 = arith.addf %26, %28 : vector<16x48xf32>
    %30 = vector.extract_strided_slice %22 {offsets = [0, 0, 0], sizes = [2, 1, 48], strides = [1, 1, 1]} : vector<2x8x48xf32> to vector<2x1x48xf32>
    %31 = vector.shape_cast %30 : vector<2x1x48xf32> to vector<2x48xf32>
    %32 = arith.truncf %31 : vector<2x48xf32> to vector<2x48xbf16>
    %c0_13 = arith.constant 0 : index
    %c0_14 = arith.constant 0 : index
    %33 = vector.load %arg3[%c0_13, %c0_14] : memref<48x48xbf16, #tpu.memory_space<vmem>>, vector<48x48xbf16>
    %cst_15 = arith.constant dense<0.000000e+00> : vector<2x48xf32>
    %34 = tpu.matmul %32, %33, %cst_15 {dimension_numbers = #tpu.dot_dimension_numbers<[1], [0], [0], [1], [0, 0, 1, 1], [], []>} : vector<2x48xbf16>, vector<48x48xbf16>, vector<2x48xf32> -> vector<2x48xf32>
    %c0_16 = arith.constant 0 : index
    %c0_17 = arith.constant 0 : index
    %35 = vector.load %arg4[%c0_16, %c0_17] : memref<1x48xf32, #tpu.memory_space<vmem>>, vector<1x48xf32>
    %36 = vector.broadcast %35 : vector<1x48xf32> to vector<2x48xf32>
    %37 = arith.addf %34, %36 : vector<2x48xf32>
    %38 = vector.shape_cast %29 : vector<16x48xf32> to vector<2x8x48xf32>
    %39 = vector.shape_cast %37 : vector<2x48xf32> to vector<2x1x48xf32>
    %40 = vector.broadcast %39 : vector<2x1x48xf32> to vector<2x8x48xf32>
    %41 = arith.mulf %38, %40 : vector<2x8x48xf32>
    %42 = vector.shape_cast %41 : vector<2x8x48xf32> to vector<16x48xf32>
    %43 = arith.truncf %42 : vector<16x48xf32> to vector<16x48xbf16>
    %c0_18 = arith.constant 0 : index
    %c0_19 = arith.constant 0 : index
    %44 = vector.load %arg7[%c0_18, %c0_19] : memref<48x6xbf16, #tpu.memory_space<vmem>>, vector<48x6xbf16>
    %cst_20 = arith.constant dense<0.000000e+00> : vector<16x6xf32>
    %45 = tpu.matmul %43, %44, %cst_20 {dimension_numbers = #tpu.dot_dimension_numbers<[1], [0], [0], [1], [0, 0, 1, 1], [], []>} : vector<16x48xbf16>, vector<48x6xbf16>, vector<16x6xf32> -> vector<16x6xf32>
    %46 = vector.shape_cast %45 : vector<16x6xf32> to vector<2x8x6xf32>
    %cst_21 = arith.constant 0.353553385 : f32
    %47 = vector.broadcast %cst_21 : f32 to vector<2x8x6xf32>
    %48 = arith.mulf %46, %47 : vector<2x8x6xf32>
    %49 = arith.negf %48 : vector<2x8x6xf32>
    %50 = math.exp %49 : vector<2x8x6xf32>
    %cst_22 = arith.constant 1.000000e+00 : f32
    %51 = vector.broadcast %cst_22 : f32 to vector<2x8x6xf32>
    %52 = arith.addf %51, %50 : vector<2x8x6xf32>
    %53 = arith.divf %51, %52 : vector<2x8x6xf32>
    %cst_23 = arith.constant dense<0.000000e+00> : vector<2x8xf32>
    %54 = vector.multi_reduction <add>, %53, %cst_23 [2] : vector<2x8x6xf32> to vector<2x8xf32>
    %cst_24 = arith.constant 6.000000e+00 : f32
    %55 = vector.broadcast %cst_24 : f32 to vector<2x8xf32>
    %56 = arith.divf %54, %55 : vector<2x8xf32>
    %57 = arith.mulf %56, %1 : vector<2x8xf32>
    %cst_25 = arith.constant 5.000000e-01 : f32
    %58 = vector.broadcast %cst_25 : f32 to vector<2x8xf32>
    %59 = arith.cmpf ogt, %57, %58 : vector<2x8xf32>
    %cst_26 = arith.constant 1.000000e+00 : f32
    %cst_27 = arith.constant 0.000000e+00 : f32
    %60 = vector.broadcast %cst_26 : f32 to vector<2x8xf32>
    %61 = vector.broadcast %cst_27 : f32 to vector<2x8xf32>
    %62 = arith.select %59, %60, %61 : vector<2x8xi1>, vector<2x8xf32>
    %63 = tpu.iota {dimensions = array<i32: 1>} : vector<2x8xi32>
    %c0_i32 = arith.constant 0 : i32
    %64 = vector.broadcast %c0_i32 : i32 to vector<2x8xi32>
    %65 = arith.cmpi eq, %63, %64 : vector<2x8xi32>
    %cst_28 = arith.constant 1.000000e+00 : f32
    %66 = vector.broadcast %cst_28 : f32 to vector<2x8xf32>
    %67 = arith.select %65, %66, %62 : vector<2x8xi1>, vector<2x8xf32>
    %68 = vector.shape_cast %67 : vector<2x8xf32> to vector<2x8x1xf32>
    %69 = vector.broadcast %68 : vector<2x8x1xf32> to vector<2x8x48xf32>
    %70 = arith.mulf %69, %0 : vector<2x8x48xf32>
    %c0_29 = arith.constant 0 : index
    %c0_30 = arith.constant 0 : index
    %c0_31 = arith.constant 0 : index
    %71 = vector.load %arg8[%c0_29, %c0_30, %c0_31] : memref<2x8x48xf32, #tpu.memory_space<vmem>>, vector<2x8x48xf32>
    tpu.vector_store %arg8[%c0_29, %c0_30, %c0_31], %70 {strides = array<i32>} : memref<2x8x48xf32, #tpu.memory_space<vmem>>, vector<2x8x48xf32>,
    %c0_32 = arith.constant 0 : index
    %c0_33 = arith.constant 0 : index
    %72 = vector.load %arg9[%c0_32, %c0_33] : memref<2x8xf32, #tpu.memory_space<vmem>>, vector<2x8xf32>
    tpu.vector_store %arg9[%c0_32, %c0_33], %67 {strides = array<i32>} : memref<2x8xf32, #tpu.memory_space<vmem>>, vector<2x8xf32>,
    %c0_34 = arith.constant 0 : index
    %c0_35 = arith.constant 0 : index
    %73 = vector.load %arg10[%c0_34, %c0_35] : memref<2x8xf32, #tpu.memory_space<vmem>>, vector<2x8xf32>
    tpu.vector_store %arg10[%c0_34, %c0_35], %57 {strides = array<i32>} : memref<2x8xf32, #tpu.memory_space<vmem>>, vector<2x8xf32>,
    return
  }
  func.func @transform_0(%arg0: i32) -> (i32, i32, i32) {
    %c0_i32 = arith.constant 0 : i32
    %c0_i32_0 = arith.constant 0 : i32
    %c0_i32_1 = arith.constant 0 : i32
    return %arg0, %c0_i32, %c0_i32_0 : i32, i32, i32
  }
  func.func @transform_1(%arg0: i32) -> (i32, i32) {
    %c0_i32 = arith.constant 0 : i32
    %c0_i32_0 = arith.constant 0 : i32
    return %arg0, %c0_i32 : i32, i32
  }
  func.func @transform_2(%arg0: i32) -> (i32, i32) {
    %c0_i32 = arith.constant 0 : i32
    %c0_i32_0 = arith.constant 0 : i32
    %c0_i32_1 = arith.constant 0 : i32
    return %c0_i32, %c0_i32_0 : i32, i32
  }
  func.func @transform_3(%arg0: i32) -> (i32, i32) {
    %c0_i32 = arith.constant 0 : i32
    %c0_i32_0 = arith.constant 0 : i32
    %c0_i32_1 = arith.constant 0 : i32
    return %c0_i32, %c0_i32_0 : i32, i32
  }
  func.func @transform_4(%arg0: i32) -> (i32, i32) {
    %c0_i32 = arith.constant 0 : i32
    %c0_i32_0 = arith.constant 0 : i32
    %c0_i32_1 = arith.constant 0 : i32
    return %c0_i32, %c0_i32_0 : i32, i32
  }
  func.func @transform_5(%arg0: i32) -> (i32, i32) {
    %c0_i32 = arith.constant 0 : i32
    %c0_i32_0 = arith.constant 0 : i32
    %c0_i32_1 = arith.constant 0 : i32
    return %c0_i32, %c0_i32_0 : i32, i32
  }
  func.func @transform_6(%arg0: i32) -> (i32, i32) {
    %c0_i32 = arith.constant 0 : i32
    %c0_i32_0 = arith.constant 0 : i32
    %c0_i32_1 = arith.constant 0 : i32
    return %c0_i32, %c0_i32_0 : i32, i32
  }
  func.func @transform_7(%arg0: i32) -> (i32, i32, i32) {
    %c0_i32 = arith.constant 0 : i32
    %c0_i32_0 = arith.constant 0 : i32
    %c0_i32_1 = arith.constant 0 : i32
    return %arg0, %c0_i32, %c0_i32_0 : i32, i32, i32
  }
  func.func @transform_8(%arg0: i32) -> (i32, i32) {
    %c0_i32 = arith.constant 0 : i32
    %c0_i32_0 = arith.constant 0 : i32
    return %arg0, %c0_i32 : i32, i32
  }
  func.func @transform_9(%arg0: i32) -> (i32, i32) {
    %c0_i32 = arith.constant 0 : i32
    %c0_i32_0 = arith.constant 0 : i32
    return %arg0, %c0_i32 : i32, i32
  }
}

</mosaic_0001>

<bundles_post_ra>
// kernel: tpu_custom_call.1
= control target key start
LH: loop header
LB: loop body
LE: loop exit
PB: predicated region body
PF: predicated region fallthrough
CT: control target
= control target key end

     0   :  { %15 = vsyncpa [#allocation3], 0  ;;  %s907_s0 = inlined_call_operand.hbm [shape: f32[2,8,48], index: 0, kind: input, shape index: {}]   ;;  %s908_s1 = inlined_call_operand.vmem [shape: f32[2,8], index: 1, kind: input, shape index: {}]   ;;  %s909_s2 = inlined_call_operand.vmem [shape: bf16[48,48], index: 2, kind: input, shape index: {}]   ;;  %s910_s3 = inlined_call_operand.vmem [shape: f32[1,48], index: 3, kind: input, shape index: {}]   ;;  %s911_s4 = inlined_call_operand.hbm [shape: bf16[48,48], index: 4, kind: input, shape index: {}]   ;;  %s912_s5 = inlined_call_operand.vmem [shape: f32[1,48], index: 5, kind: input, shape index: {}]   ;;  %s913_s6 = inlined_call_operand.vmem [shape: bf16[48,6], index: 6, kind: input, shape index: {}]   ;;  %s914_s7 = inlined_call_operand.hbm [shape: f32[2,8,48], index: 7, kind: output, shape index: {0}]   ;;  %s915_s8 = inlined_call_operand.hbm [shape: f32[2,8], index: 8, kind: output, shape index: {1}]   ;;  %s916_s9 = inlined_call_operand.hbm [shape: f32[2,8], index: 9, kind: output, shape index: {2}]  }
   0x1   :  { %16 = vsyncpa [#allocation6], 0 }
   0x2   :  { %17 = vsyncpa [#allocation4], 0 }
   0x3   :  { %18 = vsyncpa [#allocation9], 0  ;;  %s735_s30 = smov [#allocation2]  }
   0x4   :  { %s24_s10 = sshll.u32 %s735_s30, 4  ;;  %s25_s10 = int_to_ptr.vmem [resolvable:$true] %s24_s10 }
   0x5   :  { %s635_s11 = scalar_lea.vmem %s25_s10, 256  ;;  %p640_p1 = scmp.lt.s32.totalorder %s25_s10, %s25_s10 }
   0x6   :  { %p636_p0 = scmp.ne.s32.totalorder %s25_s10, %s635_s11  ;;  %p641_p2 = scmp.lt.s32.totalorder %s635_s11, %s635_s11 }
   0x8   :  { %p642_p3 = por %p641_p2, %p640_p1 }
   0xa   :  { %p643_p4 = pnand %p642_p3, %p636_p0 }
   0xc   :  { %646 = shalt.err (!%p643_p4)
}
   0xd   :  { %s736_s12 = smov 128   ;;  %s737_s13 = smov 8  }
   0xe   :  { %30 = dma.hbm_to_vmem [thread:$0]  %s907_s0, 256, %s25_s10, [#allocation3], %s736_s12, %s736_s12, %s737_s13  }
   0xf   :  { %s738_s16 = smov [#allocation5]  }
  0x10   :  { %s42_s17 = sshll.u32 %s738_s16, 4  ;;  %s43_s17 = int_to_ptr.vmem [resolvable:$true] %s42_s17 }
  0x11   :  { %s655_s18 = scalar_lea.vmem %s43_s17, 384  ;;  %p660_p6 = scmp.lt.s32.totalorder %s43_s17, %s43_s17 }
  0x12   :  { %p656_p5 = scmp.ne.s32.totalorder %s43_s17, %s655_s18  ;;  %p661_p7 = scmp.lt.s32.totalorder %s655_s18, %s655_s18 }
  0x14   :  { %p662_p8 = por %p661_p7, %p660_p6 }
  0x16   :  { %p663_p9 = pnand %p662_p8, %p656_p5 }
  0x18   :  { %666 = shalt.err (!%p663_p9)
}
  0x19   :  { %s739_s19 = smov 64   ;;  %s740_s20 = smov 4  }
  0x1a   :  { %48 = dma.hbm_to_vmem [thread:$0]  %s911_s4, 384, %s43_s17, [#allocation6], %s739_s19, %s739_s19, %s740_s20  }
  0x1b   :  { %727 = dma.done.wait [#allocation3], 256  }
  0x1c   :  { %728 = vsyncadd [#allocation3], 4294967040 }
  0x1d   :  { %729 = dma.done.wait [#allocation6], 384  }
  0x1e   :  { %730 = vsyncadd [#allocation6], 4294966912  ;;  %v63_v0 = vlaneseq  ;;  %v62_v4 = vld [vmem:[%s908_s1] sm:$0x3]  ;;  %v823_v7 = vld [vmem:[#allocation2 + $0x8] sm:$0xff]  ;;  %vm79_vm0 = vcmask 392192  }
  0x1f   :  { %v826_v10 = vld [vmem:[#allocation2] sm:$0xff]  ;;  %v608_v20 = vld [vmem:[%s909_s2 + $0x10] sm:$0xff]   ;;  %v741_v21 = vmov 0.0   ;;  %v607_v22 = vld [vmem:[#allocation5 + $0x8] sm:$0xff]   ;;  %vm742_vm1 = vmmov 0   ;;  %vm207_vm2 = vcmask 1041409  }
  0x20   :  { %v808_v1 = vshrl.u32 %v63_v0, 7  ;;  %v606_v19 = vld [vmem:[#allocation5 + $0x10] sm:$0xff]   ;;  %556 = vmatprep.subr.bf16.mxu0 %v741_v21  ;;  %566 = vmatprep.subr.bf16.mxu1 %v741_v21  ;;  %v610_v23 = vld [vmem:[%s909_s2 + $0x8] sm:$0xff]   ;;  %v609_v24 = vld [vmem:[#allocation5] sm:$0xff]   ;;  %v743_v57 = vmov 1966171168  }
  0x21   :  { %557 = vmatpush3.bf16.msra.mxu0 %v606_v19  ;;  %567 = vmatpush3.bf16.msra.mxu1 %v608_v20  ;;  %v611_v25 = vld [vmem:[%s909_s2] sm:$0xff]   ;;  %v612_v54 = vld [vmem:[%s913_s6 + $0x10] sm:$0xff]   ;;  %v613_v55 = vld [vmem:[%s913_s6 + $0x8] sm:$0xff]   ;;  %v273_v58 = vunpack.c.l.s4 %v743_v57  ;;  %vm389_vm3 = vcmask 48128   ;;  %vm462_vm6 = vcmask 58368   ;;  %s746_s17 = smov [#allocation10]  }
  0x22   :  { %v72_v2 = vsub.s32 1, %v808_v1  ;;  %v812_v3 = vsub.s32 0, %v808_v1  ;;  %558 = vmatprep.subr.bf16.mxu0 %v741_v21  ;;  %568 = vmatprep.subr.bf16.mxu1 %v741_v21  ;;  %v614_v56 = vld [vmem:[%s913_s6] sm:$0xff]   ;;  %s511_s18 = sshll.u32 %s746_s17, 4  ;;  %s512_s18 = int_to_ptr.vmem [resolvable:$true] %s511_s18 }
  0x23   :  { %562 = vmatprep.mubr.msk.bf16.mxu0 %vm742_vm1, %v741_v21  ;;  %572 = vmatprep.mubr.msk.bf16.mxu1 %vm742_vm1, %v741_v21  ;;  %v274_v60 = vunpack.c.0.s8 %v273_v58  ;;  %v533_v62 = vld [vmem:[%s910_s3] ss:$0 sm:$0xff]  ;;  %s745_s3 = smov [#allocation8]  }
  0x24   :  { %v819_v5 = vrot.slane %v62_v4, %v72_v2  ;;  %v66_v6 = vrot.slane %v62_v4, %v812_v3 }
  0x25   :  { %559 = vmatpush3.bf16.msra.mxu0 %v607_v22  ;;  %569 = vmatpush3.bf16.msra.mxu1 %v610_v23  ;;  %v277_v4 = vsub.s32 %v274_v60, %v808_v1 }
  0x26   :  { %75 = vbcast.lane.b32.xlu0 %v819_v5, 256  ;;  %560 = vmatprep.subr.bf16.mxu0 %v741_v21 }
  0x27   :  { %570 = vmatprep.subr.bf16.mxu1 %v741_v21 }
  0x29   :  { %561 = vmatpush3.bf16.msra.mxu0 %v609_v24  ;;  %571 = vmatpush3.bf16.msra.mxu1 %v611_v25 }
  0x2a   :  { %68 = vbcast.lane.b32.xlu0 %v66_v6, 256  ;;  %576 = vmatprep.subr.bf16.mxu0 %v741_v21 }
  0x98   :  { %v76_v8 = vpop.permute.xlu0 %75 }
  0x99   :  { %v78_v9 = vmul.f32 %v76_v8, %v823_v7 }
  0x9b   :  { %v83_v11 = vsel %vm79_vm0, %v78_v9, 0.0  ;;  %v90_v12 = vmul.f32 %v78_v9, %v78_v9 }
  0x9c   :  { %v69_v13 = vpop.permute.xlu0 %68  ;;  %84 = vadd.xlane.f32.xlu1 %v83_v11 }
  0x9d   :  { %v77_v14 = vmul.f32 %v69_v13, %v826_v10  ;;  %v94_v15 = vsel %vm79_vm0, %v90_v12, 0.0 }
  0x9e   :  { %95 = vadd.xlane.f32.xlu0 %v94_v15 }
  0x9f   :  { %v80_v16 = vsel %vm79_vm0, %v77_v14, 0.0  ;;  %v89_v17 = vmul.f32 %v77_v14, %v77_v14 }
  0xa0   :  { %81 = vadd.xlane.f32.xlu1 %v80_v16  ;;  %v528_v16 = vld [vmem:[%s912_s5] ss:$0 sm:$0xff]  ;;  %s501_s5 = sshll.u32 %s745_s3, 4  ;;  %s502_s5 = int_to_ptr.vmem [resolvable:$true] %s501_s5 }
  0xa1   :  { %v91_v18 = vsel %vm79_vm0, %v89_v17, 0.0  ;;  %s667_s19 = scalar_lea.vmem %s502_s5, 32  ;;  %p672_p11 = scmp.lt.s32.totalorder %s502_s5, %s502_s5 }
  0xa2   :  { %p668_p10 = scmp.ne.s32.totalorder %s502_s5, %s667_s19  ;;  %p673_p12 = scmp.lt.s32.totalorder %s667_s19, %s667_s19 }
  0xa4   :  { %92 = vadd.xlane.f32.xlu1 %v91_v18  ;;  %p674_p13 = por %p673_p12, %p672_p11 }
  0xa6   :  { %p675_p0 = pnand %p674_p13, %p668_p10 }
  0xb5   :  { %405 = vbcast.lane.b32.xlu1 %v66_v6, 256 }
 0x125   :  { %v85_v26 = vpop.xlane.xlu1 %84 }
 0x126   :  { %v88_v27 = vmul.f32 0.020833334, %v85_v26 }
 0x127   :  { %v96_v28 = vpop.xlane.xlu0 %95 }
 0x128   :  { %v100_v29 = vmul.f32 %v88_v27, %v88_v27  ;;  %v98_v30 = vmul.f32 0.020833334, %v96_v28  ;;  %v104_v40 = vsub.f32 %v78_v9, %v88_v27 }
 0x129   :  { %v82_v31 = vpop.xlane.xlu1 %81 }
 0x12a   :  { %v102_v32 = vsub.f32 %v98_v30, %v100_v29  ;;  %v87_v33 = vmul.f32 0.020833334, %v82_v31 }
 0x12c   :  { %v106_v34 = vadd.f32 1e-05, %v102_v32  ;;  %v99_v36 = vmul.f32 %v87_v33, %v87_v33  ;;  %v103_v44 = vsub.f32 %v77_v14, %v87_v33 }
 0x12d   :  { %v93_v35 = vpop.xlane.xlu1 %92 }
 0x12e   :  { %615 = vrsqrt.f32 %v106_v34  ;;  %v97_v37 = vmul.f32 0.020833334, %v93_v35 }
 0x130   :  { %v101_v38 = vsub.f32 %v97_v37, %v99_v36 }
 0x132   :  { %v105_v39 = vadd.f32 1e-05, %v101_v38 }
 0x134   :  { %617 = vrsqrt.f32 %v105_v39 }
 0x13b   :  { %v616_v41 = vpop.eup %615 }
 0x13c   :  { %v110_v42 = vmul.f32 %v616_v41, %v104_v40 }
 0x13e   :  { %v188_v43 = vpack.c.bf16 %v110_v42, %v110_v42 }
 0x140   :  { %v205_v47 = vunpack.c.l.b16 %v188_v43  ;;  %v744_v43 = vmov 0  }
 0x141   :  { %v618_v45 = vpop.eup %617  ;;  %605 = vset.pattern.permute.xlu1 %v744_v43  ;;  %599 = vset.pattern.permute.xlu0 %v744_v43 }
 0x142   :  { %v109_v46 = vmul.f32 %v618_v45, %v103_v44  ;;  %v206_v51 = vrot.slane %v205_v47, 7  ;;  %v406_v44 = vpop.permute.xlu1 %405 }
 0x144   :  { %v111_v48 = vpack.c.bf16 %v110_v42, %v109_v46  ;;  %v187_v49 = vpack.c.bf16 %v109_v46, %v109_v46 }
 0x146   :  { %563 = vmatmul.mubr.msk.bf16.vlgmr.msra.gmra.mxu0 %vm79_vm0, %v111_v48  ;;  %v204_v50 = vunpack.c.l.b16 %v187_v49 }
 0x147   :  { %582 = vmatprep.mubr.msk.bf16.mxu0 %vm742_vm1, %v741_v21  ;;  %577 = vmatpush3.bf16.msra.mxu0 %v612_v54 }
 0x148   :  { %v208_v52 = vsel %vm207_vm2, %v206_v51, %v204_v50  ;;  %578 = vmatprep.subr.bf16.mxu0 %v741_v21 }
 0x149   :  { %v209_v53 = vpack.c.b16 %v208_v52, %v208_v52 }
 0x14b   :  { %573 = vmatmul.mubr.msk.bf16.vlgmr.msra.gmra.mxu1 %vm79_vm0, %v209_v53  ;;  %579 = vmatpush3.bf16.msra.mxu0 %v613_v55 }
 0x14c   :  { %580 = vmatprep.subr.bf16.mxu0 %v741_v21 }
 0x14f   :  { %581 = vmatpush3.bf16.msra.mxu0 %v614_v56 }
 0x206   :  { %v180_v59 = vpop.f32.mrf.mxu0 }
 0x207   :  { %v181_v20 = vadd.f32 %v528_v16, %v180_v59 }
 0x208   :  { %v564_v61 = vpop.f32.mrf.mxu0 }
 0x20a   :  { %v183_v63 = vpop.f32.mrf.mxu0 }
 0x20b   :  { %v265_v6 = vpop.f32.mrf.mxu1  ;;  %v184_v22 = vadd.f32 %v528_v16, %v183_v63 }
 0x20c   :  { %v266_v8 = vadd.f32 %v533_v62, %v265_v6  ;;  %v565_v9 = vpop.f32.mrf.mxu0 }
 0x20d   :  { %v574_v11 = vpop.f32.mrf.mxu1 }
 0x20e   :  { %v278_v12 = vrot.slane %v266_v8, %v277_v4 }
 0x20f   :  { %v268_v13 = vpop.f32.mrf.mxu1 }
 0x210   :  { %v279_v14 = vcombine.high %v278_v12, %v278_v12  ;;  %v286_v15 = vrot.slane %v278_v12, %v277_v4 }
 0x211   :  { %v575_v17 = vpop.f32.mrf.mxu1 }
 0x212   :  { %v293_v18 = vrot.slane %v279_v14, %v277_v4  ;;  %v297_v19 = vrot.slane %v286_v15, %v812_v3 }
 0x214   :  { %v301_v23 = vrot.slane %v293_v18, %v812_v3  ;;  %v304_v24 = vmul.f32 %v297_v19, %v181_v20 }
 0x216   :  { %v305_v25 = vmul.f32 %v301_v23, %v184_v22 }
 0x218   :  { %v306_v26 = vpack.c.bf16 %v305_v25, %v304_v24 }
 0x21a   :  { %583 = vmatmul.mubr.msk.bf16.vlgmr.msra.gmra.mxu0 %vm79_vm0, %v306_v26 }
 0x2da   :  { %v368_v27 = vpop.f32.mrf.mxu0 }
 0x2db   :  { %v542_v28 = vmul.f32 -0.35355338, %v368_v27 }
 0x2dc   :  { %v584_v29 = vpop.f32.mrf.mxu0 }
 0x2dd   :  { %v379_v30 = vmul.f32 1.442695, %v542_v28 }
 0x2de   :  { %v371_v31 = vpop.f32.mrf.mxu0 }
 0x2df   :  { %619 = vpow2.f32 %v379_v30  ;;  %v543_v32 = vmul.f32 -0.35355338, %v371_v31 }
 0x2e0   :  { %v585_v33 = vpop.f32.mrf.mxu0 }
 0x2e1   :  { %v381_v34 = vmul.f32 1.442695, %v543_v32 }
 0x2e3   :  { %621 = vpow2.f32 %v381_v34 }
 0x2ec   :  { %v620_v35 = vpop.eup %619 }
 0x2ed   :  { %v383_v36 = vadd.f32 1.0, %v620_v35 }
 0x2ef   :  { %623 = vrcp.f32 %v383_v36 }
 0x2f0   :  { %v622_v37 = vpop.eup %621 }
 0x2f1   :  { %v384_v38 = vadd.f32 1.0, %v622_v37 }
 0x2f3   :  { %625 = vrcp.f32 %v384_v38 }
 0x2fc   :  { %v624_v39 = vpop.eup %623 }
 0x2fd   :  { %v390_v40 = vsel %vm389_vm3, %v624_v39, 0.0 }
 0x2fe   :  { %391 = vadd.xlane.f32.xlu1 %v390_v40 }
 0x300   :  { %v626_v41 = vpop.eup %625 }
 0x301   :  { %v393_v42 = vsel %vm389_vm3, %v626_v41, 0.0 }
 0x302   :  { %394 = vadd.xlane.f32.xlu1 %v393_v42 }
 0x313   :  { %412 = vbcast.lane.b32.xlu1 %v819_v5, 256  ;;  %v423_v5 = vand.u32 127, %v63_v0 }
 0x315   :  { %v435_v56 = vsub.s32 %v423_v5, %v808_v1  ;;  %vm424_vm7 = vcmp.eq.s32.totalorder %v423_v5, 0 }
 0x387   :  { %v392_v45 = vpop.xlane.xlu1 %391 }
 0x388   :  { %v397_v46 = vmul.f32 0.16666667, %v392_v45 }
 0x38a   :  { %v416_v47 = vmul.f32 %v406_v44, %v397_v46 }
 0x38b   :  { %v395_v48 = vpop.xlane.xlu1 %394 }
 0x38c   :  { %467 = vperm.xlu1 %605, %v416_v47   ;;  %v398_v49 = vmul.f32 0.16666667, %v395_v48  ;;  %vm418_vm4 = vcmp.gt.f32.partialorder %v416_v47, 0.5 }
 0x38d   :  { %v420_v53 = vsel %vm418_vm4, 1.0, %v741_v21 }
 0x38f   :  { %v413_v50 = vpop.permute.xlu1 %412 }
 0x390   :  { %v417_v51 = vmul.f32 %v413_v50, %v398_v49 }
 0x392   :  { %vm419_vm5 = vcmp.gt.f32.partialorder %v417_v51, 0.5  ;;  %470 = vperm.xlu1 %605, %v417_v51  }
 0x393   :  { %v421_v52 = vsel %vm419_vm5, 1.0, %v741_v21 }
 0x394   :  { %v600_v54 = vpack.i.bf16 %v421_v52, %v420_v53 }
 0x396   :  { %601 = vperm.xlu0 %599, %v600_v54  }
 0x407   :  { %v468_v55 = vpop.permute.xlu1 %467 }
 0x408   :  { %v475_v58 = vrot.slane %v468_v55, %v435_v56 }
 0x40d   :  { %v471_v57 = vpop.permute.xlu1 %470 }
 0x40e   :  { %v479_v59 = vrot.slane %v471_v57, %v435_v56 }
 0x410   :  { %v480_v60 = vsel %vm207_vm2, %v479_v59, %v475_v58 }
 0x411   :  { %v602_v61 = vpop.permute.xlu0 %601  ;;  %482 = vst.msk [vmem:[#allocation10] sm:$0x3] %vm462_vm6, %v480_v60 }
 0x412   :  { %v604_v62 = vunpack.i.h.bf16 %v602_v61  ;;  %v603_v63 = vunpack.i.l.bf16 %v602_v61 }
 0x414   :  { %v440_v21 = vrot.slane %v604_v62, %v435_v56  ;;  %v436_v4 = vrot.slane %v603_v63, %v435_v56 }
 0x416   :  { %v441_v0 = vsel %vm207_vm2, %v440_v21, %v436_v4 }
 0x417   :  { %v443_v6 = vsel %vm424_vm7, 1.0, %v441_v0 }
 0x418   :  { %v447_v8 = vrot.slane %v443_v6, %v812_v3  ;;  %463 = vst.msk [vmem:[#allocation8] sm:$0x3] %vm462_vm6, %v443_v6 }
 0x419   :  { %678 = shalt.err (!%p675_p0)
}
 0x41a   :  { %504 = dma.vmem_to_hbm [thread:$0]  %s502_s5, 32, %s915_s8, [#allocation9]   ;;  %449 = vbcast.lane.b32.xlu1 %v447_v8, 256 }
 0x41b   :  { %s687_s22 = scalar_lea.vmem %s512_s18, 32  ;;  %p692_p2 = scmp.lt.s32.totalorder %s512_s18, %s512_s18 }
 0x41c   :  { %p688_p1 = scmp.ne.s32.totalorder %s512_s18, %s687_s22  ;;  %p693_p3 = scmp.lt.s32.totalorder %s687_s22, %s687_s22 }
 0x41e   :  { %p694_p4 = por %p693_p3, %p692_p2 }
 0x420   :  { %p695_p5 = pnand %p694_p4, %p688_p1 }
 0x422   :  { %698 = shalt.err (!%p695_p5)
}
 0x423   :  { %514 = dma.vmem_to_hbm [thread:$0]  %s512_s18, 32, %s916_s9, [#allocation9]   ;;  %v454_v3 = vrot.slane %v443_v6, %v72_v2 }
 0x424   :  { %s747_s8 = smov [#allocation7]  }
 0x425   :  { %456 = vbcast.lane.b32.xlu1 %v454_v3, 256  ;;  %s488_s1 = sshll.u32 %s747_s8, 4  ;;  %s489_s1 = int_to_ptr.vmem [resolvable:$true] %s488_s1 }
 0x426   :  { %s707_s4 = scalar_lea.vmem %s489_s1, 256  ;;  %p712_p7 = scmp.lt.s32.totalorder %s489_s1, %s489_s1 }
 0x427   :  { %p708_p6 = scmp.ne.s32.totalorder %s489_s1, %s707_s4  ;;  %p713_p8 = scmp.lt.s32.totalorder %s707_s4, %s707_s4 }
 0x429   :  { %p714_p9 = por %p713_p8, %p712_p7 }
 0x42b   :  { %p715_p10 = pnand %p714_p9, %p708_p6 }
 0x48c   :  { %v450_v9 = vpop.permute.xlu1 %449 }
 0x48d   :  { %v458_v11 = vmul.f32 %v450_v9, %v826_v10 }
 0x48f   :  { %460 = vst.msk [vmem:[#allocation7] sm:$0xff] %vm79_vm0, %v458_v11 }
 0x497   :  { %v457_v12 = vpop.permute.xlu1 %456 }
 0x498   :  { %v459_v13 = vmul.f32 %v457_v12, %v823_v7 }
 0x49a   :  { %461 = vst.msk [vmem:[#allocation7 + $0x8] sm:$0xff] %vm79_vm0, %v459_v13 }
 0x49b   :  { %718 = shalt.err (!%p715_p10)
}
 0x49c   :  { %494 = dma.vmem_to_hbm [thread:$0]  %s489_s1, 256, %s914_s7, [#allocation4], %s736_s12, %s736_s12, %s737_s13  }
 0x49d   :  { %731 = dma.done.wait [#allocation4], 256  }
 0x49e   :  { %732 = vsyncadd [#allocation4], 4294967040 }
 0x49f   :  { %733 = dma.done.wait [#allocation9], 64  }
 0x4a0   :  { %734 = vsyncadd [#allocation9], 4294967232 }
 0x4a1   :  { %524 = vsyncpa [#allocation3], 1 }
 0x4a2   :  { %525 = vsyncpa [#allocation6], 1 }
 0x4a3   :  { %526 = vsyncpa [#allocation4], 1 }
 0x4a4   :  { %527 = vsyncpa [#allocation9], 1 }

</bundles_post_ra>
